<compile_context>
chip_gen: v7x
topology: tpu7x:2x2x1
jax: 0.10.0
libtpu: 0.0.40
codegen_flags: <defaults>
</compile_context>

<pallas_src>
import jax
import jax.numpy as jnp
from jax.experimental import pallas as pl
from jax.experimental.pallas import tpu as pltpu


def _round_up(n, m):
    return ((n + m - 1) // m) * m


def _mlp_kernel(x_ref, w1_ref, b1_ref, w2_ref, b2_ref, w3_ref, b3_ref, o_ref):
    # x_ref: (D, TB) bf16, batch on lanes (everything below is lane-dense).
    x = x_ref[...]

    # Layer 1: (64, D) @ (D, TB) -> (64, TB); f32 accumulate, bias+ReLU in f32.
    h1 = jnp.dot(w1_ref[...], x, preferred_element_type=jnp.float32)
    h1 = jnp.maximum(h1 + b1_ref[...], 0.0)

    # Layer 2: (32, 64) @ (64, TB) -> (32, TB).
    h2 = jnp.dot(w2_ref[...], h1.astype(jnp.bfloat16),
                 preferred_element_type=jnp.float32)
    h2 = jnp.maximum(h2 + b2_ref[...], 0.0)

    # Layer 3 (32 -> 1): VPU multiply + sublane (XLU) reduce instead of a
    # wasteful single-row MXU matmul.  Result is a lane-dense (1, TB) slab.
    z = jnp.sum(h2 * w3_ref[...], axis=0, keepdims=True) + b3_ref[...]

    # Sigmoid: exp and reciprocal both route to the EUP slot.
    o_ref[...] = pl.reciprocal(1.0 + jnp.exp(-z), approx=True).astype(o_ref.dtype)


def fraud_detection_forward(x, params, *, tb=8192):
    """x: [B, D] float array; returns [B, 1] float32 probabilities.

    params: w1 (64, D), b1 (64, 1), w2 (32, 64), b2 (32, 1),
            w3 (32, 1) (layer-3 weight stored as a column), b3 (1, 1).
    """
    B, D = x.shape
    # TB: multiple of 128 (lane width); default keeps the double-buffered x
    # tile plus f32 intermediates well under the scoped-VMEM limits on every
    # chip (v5e/v6e/v7x).
    TB = min(_round_up(tb, 128), _round_up(B, 128))
    Bp = _round_up(B, TB)
    grid = (Bp // TB,)

    # Weights: bf16 for MXU operands (tiny, one-time cast); f32 for VPU math.
    w1 = params["w1"].astype(jnp.bfloat16)   # (64, D)
    b1 = params["b1"].astype(jnp.float32)    # (64, 1)
    w2 = params["w2"].astype(jnp.bfloat16)   # (32, 64)
    b2 = params["b2"].astype(jnp.float32)    # (32, 1)
    w3 = params["w3"].astype(jnp.float32)    # (32, 1)
    b3 = params["b3"].astype(jnp.float32)    # (1, 1)

    # Layout plumbing: pad batch to a tile multiple, halve the streamed bytes
    # with bf16, and put batch on lanes (features on sublanes).
    x_p = jnp.pad(x.astype(jnp.bfloat16), ((0, Bp - B), (0, 0)))
    xT = x_p.T                               # (D, Bp) bf16

    out = pl.pallas_call(
        _mlp_kernel,
        out_shape=jax.ShapeDtypeStruct((1, Bp), jnp.float32),
        grid=grid,
        in_specs=[
            pl.BlockSpec((D, TB), lambda i: (0, i)),    # x^T tile (pipelined)
            pl.BlockSpec((64, D), lambda i: (0, 0)),    # w1 (VMEM-resident)
            pl.BlockSpec((64, 1), lambda i: (0, 0)),    # b1
            pl.BlockSpec((32, 64), lambda i: (0, 0)),   # w2
            pl.BlockSpec((32, 1), lambda i: (0, 0)),    # b2
            pl.BlockSpec((32, 1), lambda i: (0, 0)),    # w3 (column)
            pl.BlockSpec((1, 1), lambda i: (0, 0)),     # b3
        ],
        out_specs=pl.BlockSpec((1, TB), lambda i: (0, i)),  # lane-dense output
        compiler_params=pltpu.CompilerParams(
            dimension_semantics=("parallel",),   # shard batch tiles across TCs
            vmem_limit_bytes=32 * 1024 * 1024,
        ),
    )(xT, w1, b1, w2, b2, w3, b3)

    return out[0, :B][:, None]               # (B, 1) float32


def init_params(key, input_size):
    """Deterministic init mirroring nn.Linear: U(-1/sqrt(fan_in), 1/sqrt(fan_in))."""
    ks = jax.random.split(key, 6)

    def uniform(k, shape, fan_in):
        bound = 1.0 / (fan_in ** 0.5)
        return jax.random.uniform(k, shape, jnp.float32, -bound, bound)

    return {
        "w1": uniform(ks[0], (64, input_size), input_size),
        "b1": uniform(ks[1], (64, 1), input_size),
        "w2": uniform(ks[2], (32, 64), 64),
        "b2": uniform(ks[3], (32, 1), 64),
        "w3": uniform(ks[4], (32, 1), 32),
        "b3": uniform(ks[5], (1, 1), 32),
    }


if __name__ == "__main__":
    key = jax.random.PRNGKey(0)
    k_x, k_p = jax.random.split(key)

    # Small demo: B=200 with tb=128 exercises multiple grid steps plus the
    # padded partial batch tile.
    B, input_size = 200, 32
    x = jax.random.normal(k_x, (B, input_size), jnp.float32)
    params = init_params(k_p, input_size)

    fwd = jax.jit(lambda xx: fraud_detection_forward(xx, params, tb=128))
    out = jax.block_until_ready(fwd(x))

    # Pure-JAX f32 reference (same math as the PyTorch forward).
    h = jnp.maximum(x @ params["w1"].T + params["b1"][:, 0], 0.0)
    h = jnp.maximum(h @ params["w2"].T + params["b2"][:, 0], 0.0)
    ref = jax.nn.sigmoid(h @ params["w3"] + params["b3"])

    assert out.shape == (B, 1), out.shape
    assert bool(jnp.all(jnp.isfinite(out)))
    # bf16 matmul operands + approx reciprocal -> loose tolerance.
    assert jnp.allclose(out, ref, atol=2e-2), float(jnp.max(jnp.abs(out - ref)))

    print("KERNEL_OK")
</pallas_src>

<mosaic_0001>
module attributes {stable_mosaic.version = 11 : i64} {
  func.func @_mlp_kernel(%arg0: i32, %arg1: memref<32x128xbf16, #tpu.memory_space<vmem>>, %arg2: memref<64x32xbf16, #tpu.memory_space<vmem>>, %arg3: memref<64x1xf32, #tpu.memory_space<vmem>>, %arg4: memref<32x64xbf16, #tpu.memory_space<vmem>>, %arg5: memref<32x1xf32, #tpu.memory_space<vmem>>, %arg6: memref<32x1xf32, #tpu.memory_space<vmem>>, %arg7: memref<1x1xf32, #tpu.memory_space<vmem>>, %arg8: memref<1x128xf32, #tpu.memory_space<vmem>>) attributes {dimension_semantics = [#tpu.dimension_semantics<parallel>], iteration_bounds = array<i64: 2>, scalar_prefetch = 0 : i64, scratch_operands = 0 : i64, tpu.core_type = #tpu.core_type<tc>, window_params = [{transform_indices = @transform_0, window_bounds = array<i64: 32, 128>}, {pipeline_mode = #tpu.pipeline_mode<synchronous>, transform_indices = @transform_1, window_bounds = array<i64: 64, 32>}, {pipeline_mode = #tpu.pipeline_mode<synchronous>, transform_indices = @transform_2, window_bounds = array<i64: 64, 1>}, {pipeline_mode = #tpu.pipeline_mode<synchronous>, transform_indices = @transform_3, window_bounds = array<i64: 32, 64>}, {pipeline_mode = #tpu.pipeline_mode<synchronous>, transform_indices = @transform_4, window_bounds = array<i64: 32, 1>}, {pipeline_mode = #tpu.pipeline_mode<synchronous>, transform_indices = @transform_5, window_bounds = array<i64: 32, 1>}, {pipeline_mode = #tpu.pipeline_mode<synchronous>, transform_indices = @transform_6, window_bounds = array<i64: 1, 1>}, {transform_indices = @transform_7, window_bounds = array<i64: 1, 128>}]} {
    %c0 = arith.constant 0 : index
    %c0_0 = arith.constant 0 : index
    %0 = vector.load %arg1[%c0, %c0_0] : memref<32x128xbf16, #tpu.memory_space<vmem>>, vector<32x128xbf16>
    %c0_1 = arith.constant 0 : index
    %c0_2 = arith.constant 0 : index
    %1 = vector.load %arg2[%c0_1, %c0_2] : memref<64x32xbf16, #tpu.memory_space<vmem>>, vector<64x32xbf16>
    %cst = arith.constant dense<0.000000e+00> : vector<64x128xf32>
    %2 = tpu.matmul %1, %0, %cst {dimension_numbers = #tpu.dot_dimension_numbers<[1], [0], [0], [1], [0, 0, 1, 1], [], []>} : vector<64x32xbf16>, vector<32x128xbf16>, vector<64x128xf32> -> vector<64x128xf32>
    %c0_3 = arith.constant 0 : index
    %c0_4 = arith.constant 0 : index
    %3 = vector.load %arg3[%c0_3, %c0_4] : memref<64x1xf32, #tpu.memory_space<vmem>>, vector<64x1xf32>
    %4 = vector.broadcast %3 : vector<64x1xf32> to vector<64x128xf32>
    %5 = arith.addf %2, %4 : vector<64x128xf32>
    %cst_5 = arith.constant 0.000000e+00 : f32
    %6 = vector.broadcast %cst_5 : f32 to vector<64x128xf32>
    %7 = arith.maximumf %5, %6 : vector<64x128xf32>
    %c0_6 = arith.constant 0 : index
    %c0_7 = arith.constant 0 : index
    %8 = vector.load %arg4[%c0_6, %c0_7] : memref<32x64xbf16, #tpu.memory_space<vmem>>, vector<32x64xbf16>
    %9 = arith.truncf %7 : vector<64x128xf32> to vector<64x128xbf16>
    %cst_8 = arith.constant dense<0.000000e+00> : vector<32x128xf32>
    %10 = tpu.matmul %8, %9, %cst_8 {dimension_numbers = #tpu.dot_dimension_numbers<[1], [0], [0], [1], [0, 0, 1, 1], [], []>} : vector<32x64xbf16>, vector<64x128xbf16>, vector<32x128xf32> -> vector<32x128xf32>
    %c0_9 = arith.constant 0 : index
    %c0_10 = arith.constant 0 : index
    %11 = vector.load %arg5[%c0_9, %c0_10] : memref<32x1xf32, #tpu.memory_space<vmem>>, vector<32x1xf32>
    %12 = vector.broadcast %11 : vector<32x1xf32> to vector<32x128xf32>
    %13 = arith.addf %10, %12 : vector<32x128xf32>
    %cst_11 = arith.constant 0.000000e+00 : f32
    %14 = vector.broadcast %cst_11 : f32 to vector<32x128xf32>
    %15 = arith.maximumf %13, %14 : vector<32x128xf32>
    %c0_12 = arith.constant 0 : index
    %c0_13 = arith.constant 0 : index
    %16 = vector.load %arg6[%c0_12, %c0_13] : memref<32x1xf32, #tpu.memory_space<vmem>>, vector<32x1xf32>
    %17 = vector.broadcast %16 : vector<32x1xf32> to vector<32x128xf32>
    %18 = arith.mulf %15, %17 : vector<32x128xf32>
    %cst_14 = arith.constant dense<0.000000e+00> : vector<128xf32>
    %19 = vector.multi_reduction <add>, %18, %cst_14 [0] : vector<32x128xf32> to vector<128xf32>
    %20 = vector.shape_cast %19 : vector<128xf32> to vector<1x128xf32>
    %c0_15 = arith.constant 0 : index
    %c0_16 = arith.constant 0 : index
    %21 = vector.load %arg7[%c0_15, %c0_16] : memref<1x1xf32, #tpu.memory_space<vmem>>, vector<1x1xf32>
    %22 = vector.broadcast %21 : vector<1x1xf32> to vector<1x128xf32>
    %23 = arith.addf %20, %22 : vector<1x128xf32>
    %cst_17 = arith.constant 0.000000e+00 : f32
    %24 = vector.broadcast %cst_17 : f32 to vector<1x128xf32>
    %25 = arith.subf %24, %23 : vector<1x128xf32>
    %26 = math.exp %25 : vector<1x128xf32>
    %cst_18 = arith.constant 1.000000e+00 : f32
    %27 = vector.broadcast %cst_18 : f32 to vector<1x128xf32>
    %28 = arith.addf %27, %26 : vector<1x128xf32>
    %29 = tpu.reciprocal %28 {approx = true} : vector<1x128xf32> -> vector<1x128xf32>
    %c0_19 = arith.constant 0 : index
    %c0_20 = arith.constant 0 : index
    %30 = vector.load %arg8[%c0_19, %c0_20] : memref<1x128xf32, #tpu.memory_space<vmem>>, vector<1x128xf32>
    tpu.vector_store %arg8[%c0_19, %c0_20], %29 {strides = array<i32>} : memref<1x128xf32, #tpu.memory_space<vmem>>, vector<1x128xf32>,
    return
  }
  func.func @transform_0(%arg0: i32) -> (i32, i32) {
    %c0_i32 = arith.constant 0 : i32
    %c0_i32_0 = arith.constant 0 : i32
    return %c0_i32, %arg0 : i32, i32
  }
  func.func @transform_1(%arg0: i32) -> (i32, i32) {
    %c0_i32 = arith.constant 0 : i32
    %c0_i32_0 = arith.constant 0 : i32
    %c0_i32_1 = arith.constant 0 : i32
    return %c0_i32, %c0_i32_0 : i32, i32
  }
  func.func @transform_2(%arg0: i32) -> (i32, i32) {
    %c0_i32 = arith.constant 0 : i32
    %c0_i32_0 = arith.constant 0 : i32
    %c0_i32_1 = arith.constant 0 : i32
    return %c0_i32, %c0_i32_0 : i32, i32
  }
  func.func @transform_3(%arg0: i32) -> (i32, i32) {
    %c0_i32 = arith.constant 0 : i32
    %c0_i32_0 = arith.constant 0 : i32
    %c0_i32_1 = arith.constant 0 : i32
    return %c0_i32, %c0_i32_0 : i32, i32
  }
  func.func @transform_4(%arg0: i32) -> (i32, i32) {
    %c0_i32 = arith.constant 0 : i32
    %c0_i32_0 = arith.constant 0 : i32
    %c0_i32_1 = arith.constant 0 : i32
    return %c0_i32, %c0_i32_0 : i32, i32
  }
  func.func @transform_5(%arg0: i32) -> (i32, i32) {
    %c0_i32 = arith.constant 0 : i32
    %c0_i32_0 = arith.constant 0 : i32
    %c0_i32_1 = arith.constant 0 : i32
    return %c0_i32, %c0_i32_0 : i32, i32
  }
  func.func @transform_6(%arg0: i32) -> (i32, i32) {
    %c0_i32 = arith.constant 0 : i32
    %c0_i32_0 = arith.constant 0 : i32
    %c0_i32_1 = arith.constant 0 : i32
    return %c0_i32, %c0_i32_0 : i32, i32
  }
  func.func @transform_7(%arg0: i32) -> (i32, i32) {
    %c0_i32 = arith.constant 0 : i32
    %c0_i32_0 = arith.constant 0 : i32
    return %c0_i32, %arg0 : i32, i32
  }
}

</mosaic_0001>

<bundles_post_ra>
// kernel: _lambda_.1
= control target key start
LH: loop header
LB: loop body
LE: loop exit
PB: predicated region body
PF: predicated region fallthrough
CT: control target
= control target key end

     0   :  { %s1011_s0 = inlined_call_operand.vmem [shape: bf16[32,256], index: 0, kind: input, shape index: {}]   ;;  %s1012_s1 = inlined_call_operand.vmem [shape: bf16[64,32], index: 1, kind: input, shape index: {}]   ;;  %s1013_s2 = inlined_call_operand.vmem [shape: f32[64,1], index: 2, kind: input, shape index: {}]   ;;  %s1014_s3 = inlined_call_operand.vmem [shape: bf16[32,64], index: 3, kind: input, shape index: {}]   ;;  %s1015_s4 = inlined_call_operand.vmem [shape: f32[32,1], index: 4, kind: input, shape index: {}]   ;;  %s1016_s5 = inlined_call_operand.vmem [shape: f32[32,1], index: 5, kind: input, shape index: {}]   ;;  %s1017_s6 = inlined_call_operand.<no memory space> [shape: f32[1,1], index: 6, kind: input, shape index: {}]   ;;  %s1018_s7 = inlined_call_operand.vmem [shape: f32[1,256], index: 7, kind: output, shape index: {}]  }
   0x1   :  { %v12_v0 = vstv %s1017_s6 }
   0x2   :  { %13 = vst [vmem:[#allocation2] sm:$0x1] %v12_v0 }
   0x3   :  { %s885_s26 = smov 0   ;;  %s887_s27 = smov 0  }
   0x4   :  { %s889_s28 = smov 0  }
   0x5 LB: > { %s718_s6 = sadd.s32 4294967295, %s839_s28   ;;  %s902_s29 = sadd.s32 1, %s839_s28   ;;  %s839_s28 = sphi %s889_s28, %s1021_s28   ;;  %s835_s27 = sphi %s887_s27, %s1020_s27   ;;  %s831_s26 = sphi %s885_s26, %s1019_s26  }
   0x6   : > { %s23_s30 = ssub.s32 %s839_s28, %s902_s29  ;;  %s26_s8 = sadd.s32 1, %s835_s27 }
   0x7   : > { %p24_p0 = scmp.eq.s32.totalorder %s23_s30, 0  ;;  %p33_p1 = scmp.ne.s32.totalorder %s835_s27, %s831_s26 }
   0x8   : > { %p34_p2 = scmp.eq.s32.totalorder %s839_s28, 0  ;;  %p721_p4 = scmp.ge.s32.totalorder %s839_s28, 2 }
   0x9   : > { %s911_s9 = scalar_select %p24_p0, %s835_s27, %s26_s8  }
   0xa   : > { %p35_p3 = por %p34_p2, %p33_p1  ;;  %229 = sbr.rel (%p721_p4) target bundleno = 24 (0x18), region = 40 }
  0x11   : > { %232 = sbr.rel (!%p35_p3) target bundleno = 24 (0x18), region = 44  ;;  %s234_s10 = sand.u32 (%p35_p3), 1, %s835_s27  }
  0x12   : > { %s723_s11 = sshll.u32 (%p35_p3), %s839_s28, 2  ;;  %s722_s12 = sshll.u32 (%p35_p3), %s234_s10, 4 }
  0x13   : > { %s238_s15 = scalar_lea.vmem (%p35_p3), %s1011_s0, %s723_s11  ;;  %s236_s16 = scalar_lea.vmem (%p35_p3), [#allocation3], %s722_s12 }
  0x14   : > { %v254_v1 = vld [vmem:[%s238_s15] sm:$0xf] (%p35_p3)  ;;  %v256_v2 = vld [vmem:[%s238_s15 + $0x8] sm:$0xf] (%p35_p3)  ;;  %v258_v3 = vld [vmem:[%s238_s15 + $0x10] sm:$0xf] (%p35_p3) }
  0x15   : > { %255 = vst [vmem:[%s236_s16] sm:$0xf] (%p35_p3), %v254_v1  ;;  %257 = vst [vmem:[%s236_s16 + $0x4] sm:$0xf] (%p35_p3), %v256_v2  ;;  %v260_v4 = vld [vmem:[%s238_s15 + $0x18] sm:$0xf] (%p35_p3) }
  0x16   : > { %259 = vst [vmem:[%s236_s16 + $0x8] sm:$0xf] (%p35_p3), %v258_v3  ;;  %261 = vst [vmem:[%s236_s16 + $0xc] sm:$0xf] (%p35_p3), %v260_v4 }
  0x18 PF: > { %p724_p5 = scmp.ge.s32.totalorder %s839_s28, 1  ;;  %p291_p6 = scmp.lt.s32.totalorder %s839_s28, 3 }
  0x1a   : > { %p292_p7 = pnand %p724_p5, %p291_p6 }
  0x1b   : > { %s298_s17 = sand.u32 (!%p292_p7), 1, %s831_s26   ;;  %v807_v5 = vld [vmem:[%s1012_s1] sm:$0xff] (!%p292_p7)   ;;  %vm423_vm0 = vcmask (!%p292_p7), 261120   ;;  %v841_v8 = vmov (!%p292_p7), 0   ;;  %v345_v10 = vld [vmem:[%s1013_s2 + $0x10] sm:$0xff] (!%p292_p7)  ;;  %v344_v11 = vld [vmem:[%s1013_s2 + $0x8] sm:$0xff] (!%p292_p7) }
  0x1c   : > { %295 = sbr.rel (%p292_p7) target bundleno = 546 (0x222), region = 85  ;;  %s725_s20 = sshll.u32 (!%p292_p7), %s298_s17, 4  ;;  %758 = vmatprep.mubr.msk.bf16.mxu0 (!%p292_p7), %vm423_vm0, %v807_v5  ;;  %803 = vset.pattern.permute.xlu0 (!%p292_p7), %v841_v8  ;;  %v343_v9 = vld [vmem:[%s1013_s2] sm:$0xff] (!%p292_p7)  ;;  %v808_v12 = vld [vmem:[%s1012_s1 + $0x8] sm:$0xff] (!%p292_p7)   ;;  %v346_v13 = vld [vmem:[%s1013_s2 + $0x18] sm:$0xff] (!%p292_p7)  ;;  %vm551_vm1 = vcmask (!%p292_p7), 523264  }
  0x1d   : > { %s300_s21 = scalar_lea.vmem (!%p292_p7), [#allocation3], %s725_s20  ;;  %804 = vset.pattern.permute.xlu1 (!%p292_p7), %v841_v8  ;;  %353 = vperm.xlu0 (!%p292_p7), %803, %v343_v9   ;;  %v809_v14 = vld [vmem:[%s1012_s1 + $0x10] sm:$0xff] (!%p292_p7)   ;;  %v347_v15 = vld [vmem:[%s1013_s2 + $0x20] sm:$0xff] (!%p292_p7)  ;;  %v348_v16 = vld [vmem:[%s1013_s2 + $0x28] sm:$0xff] (!%p292_p7)  ;;  %p327_p8 = scmp.lt.s32.totalorder (!%p292_p7), %s718_s6, 1 }
  0x1e   : > { %v805_v6 = vld [vmem:[%s300_s21] sm:$0xff] (!%p292_p7)   ;;  %v806_v7 = vld [vmem:[%s300_s21 + $0x8] sm:$0xff] (!%p292_p7)   ;;  %363 = vperm.xlu1 (!%p292_p7), %804, %v345_v10  }
  0x1f   : > { %754 = vmatprep.subr.bf16.mxu0 (!%p292_p7), %v805_v6  ;;  %v349_v17 = vld [vmem:[%s1013_s2 + $0x30] sm:$0xff] (!%p292_p7)  ;;  %v810_v18 = vld [vmem:[%s1012_s1 + $0x18] sm:$0xff] (!%p292_p7)   ;;  %v517_v20 = vld [vmem:[%s1015_s4] sm:$0xff] (!%p292_p7) }
  0x20   : > { %755 = vmatpush3.bf16.msra.mxu0 (!%p292_p7), %v805_v6  ;;  %v350_v19 = vld [vmem:[%s1013_s2 + $0x38] sm:$0xff] (!%p292_p7)  ;;  %v518_v21 = vld [vmem:[%s1015_s4 + $0x8] sm:$0xff] (!%p292_p7)  ;;  %v519_v22 = vld [vmem:[%s1015_s4 + $0x10] sm:$0xff] (!%p292_p7) }
  0x21   : > { %756 = vmatprep.subr.bf16.mxu0 (!%p292_p7), %v806_v7  ;;  %358 = vperm.xlu0 (!%p292_p7), %803, %v344_v11   ;;  %v520_v23 = vld [vmem:[%s1015_s4 + $0x18] sm:$0xff] (!%p292_p7)  ;;  %v611_v24 = vld [vmem:[%s1016_s5] sm:$0xff] (!%p292_p7)  ;;  %v612_v25 = vld [vmem:[%s1016_s5 + $0x8] sm:$0xff] (!%p292_p7) }
  0x22   : > { %368 = vperm.xlu1 (!%p292_p7), %804, %v346_v13   ;;  %v613_v26 = vld [vmem:[%s1016_s5 + $0x10] sm:$0xff] (!%p292_p7)  ;;  %v614_v27 = vld [vmem:[%s1016_s5 + $0x18] sm:$0xff] (!%p292_p7)  ;;  %v648_v28 = vld [vmem:[#allocation2] sm:$0x1] (!%p292_p7) }
  0x23   : > { %v811_v29 = vld [vmem:[%s1014_s3] sm:$0xff]   ;;  %v812_v2 = vld [vmem:[%s1014_s3 + $0x8] sm:$0xff]   ;;  %s1023_s6 = smov (!%p327_p8, %s718_s6), 1 }
  0x24   : > { %757 = vmatpush3.bf16.msra.mxu0 %v806_v7  ;;  %774 = vmatprep.mubr.msk.bf16.mxu1 %vm551_vm1, %v811_v29  ;;  %v654_v29 = vlaneseq  ;;  %s329_s8 = scalar_lea.vmem %s1018_s7, %s1023_s6 }
  0x25   : > { %373 = vperm.xlu0 %803, %v347_v15  }
  0x26   : > { %378 = vperm.xlu1 %804, %v348_v16  }
  0x27   : > { %759 = vmatmul.mubr.msk.bf16.vlgmr.msra.gmra.mrb[0].mxu0 %vm423_vm0, %v808_v12 }
  0x28   : > { %762 = vmatprep.mubr.msk.bf16.mxu0 %vm423_vm0, %v809_v14 }
  0x29   : > { %383 = vperm.xlu0 %803, %v349_v17  }
  0x2a   : > { %388 = vperm.xlu1 %804, %v350_v19  }
  0x2d   : > { %523 = vperm.xlu0 %803, %v517_v20  }
  0x2e   : > { %528 = vperm.xlu1 %804, %v518_v21  }
  0x2f   : > { %763 = vmatmul.mubr.msk.bf16.gmra.mrb[4].mxu0 %vm423_vm0, %v810_v18 }
  0x31   : > { %533 = vperm.xlu0 %803, %v519_v22  }
  0x32   : > { %538 = vperm.xlu1 %804, %v520_v23  }
  0x35   : > { %617 = vperm.xlu0 %803, %v611_v24  }
  0x36   : > { %622 = vperm.xlu1 %804, %v612_v25  }
  0x39   : > { %627 = vperm.xlu0 %803, %v613_v26  }
  0x3a   : > { %632 = vperm.xlu1 %804, %v614_v27  }
  0x3d   : > { %651 = vperm.xlu0 %803, %v648_v28  }
  0x9c   : > { %v354_v30 = vpop.permute.xlu0 %353 }
  0x9d   : > { %v364_v31 = vpop.permute.xlu1 %363 }
  0xa0   : > { %v359_v32 = vpop.permute.xlu0 %358 }
  0xa1   : > { %v369_v33 = vpop.permute.xlu1 %368 }
  0xa4   : > { %v374_v37 = vpop.permute.xlu0 %373 }
  0xa5   : > { %v379_v42 = vpop.permute.xlu1 %378 }
  0xa8   : > { %v384_v49 = vpop.permute.xlu0 %383 }
  0xa9   : > { %v389_v54 = vpop.permute.xlu1 %388 }
  0xac   : > { %v524_v3 = vpop.permute.xlu0 %523 }
  0xad   : > { %v529_v4 = vpop.permute.xlu1 %528 }
  0xb0   : > { %v534_v5 = vpop.permute.xlu0 %533 }
  0xb1   : > { %v539_v6 = vpop.permute.xlu1 %538 }
  0xb4   : > { %v618_v12 = vpop.permute.xlu0 %617 }
  0xb5   : > { %v623_v17 = vpop.permute.xlu1 %622 }
  0xb8   : > { %v628_v23 = vpop.permute.xlu0 %627 }
  0xb9   : > { %v633_v26 = vpop.permute.xlu1 %632 }
  0xfa   : > { %v760_v34 = vpop.f32.mrb[0].mxu0 }
  0xfb   : > { %v479_v35 = vadd.f32 %v760_v34, %v364_v31  ;;  %v470_v36 = vpop.f32.mrb[1].mxu0 }
  0xfc   : > { %v471_v38 = vadd.f32 %v470_v36, %v354_v30  ;;  %v761_v39 = vpop.f32.mrb[2].mxu0 }
  0xfd   : > { %v482_v40 = vadd.f32 %v761_v39, %v369_v33  ;;  %v473_v41 = vpop.f32.mrb[3].mxu0  ;;  %v503_v44 = vmax.f32 %v479_v35, 0.0 }
  0xfe   : > { %v474_v43 = vadd.f32 %v473_v41, %v359_v32  ;;  %v501_v46 = vmax.f32 %v471_v38, 0.0  ;;  %v655_v32 = vshrl.u32 %v654_v29, 7 }
  0xff   : > { %v504_v45 = vmax.f32 %v482_v40, 0.0 }
 0x100   : > { %v502_v47 = vmax.f32 %v474_v43, 0.0  ;;  %v656_v35 = vsub.s32 0, %v655_v32 }
 0x101   : > { %v514_v48 = vpack.c.bf16 %v504_v45, %v503_v44 }
 0x102   : > { %v764_v50 = vpop.f32.mrb[4].mxu0  ;;  %v513_v51 = vpack.c.bf16 %v502_v47, %v501_v46 }
 0x103   : > { %v495_v52 = vadd.f32 %v764_v50, %v384_v49  ;;  %v486_v53 = vpop.f32.mrb[5].mxu0 }
 0x104   : > { %v487_v55 = vadd.f32 %v486_v53, %v374_v37  ;;  %v765_v56 = vpop.f32.mrb[6].mxu0  ;;  %766 = vmatprep.subr.bf16.mxu1 %v513_v51  ;;  %v652_v37 = vpop.permute.xlu0 %651 }
 0x105   : > { %v498_v57 = vadd.f32 %v765_v56, %v389_v54  ;;  %v489_v58 = vpop.f32.mrb[7].mxu0  ;;  %767 = vmatpush3.bf16.msra.mxu1 %v513_v51  ;;  %v507_v60 = vmax.f32 %v495_v52, 0.0  ;;  %v657_v39 = vrot.slane %v652_v37, %v656_v35 }
 0x106   : > { %v490_v59 = vadd.f32 %v489_v58, %v379_v42  ;;  %768 = vmatprep.subr.bf16.mxu1 %v514_v48  ;;  %v505_v62 = vmax.f32 %v487_v55, 0.0 }
 0x107   : > { %v508_v61 = vmax.f32 %v498_v57, 0.0 }
 0x108   : > { %v506_v63 = vmax.f32 %v490_v59, 0.0 }
 0x109   : > { %v516_v0 = vpack.c.bf16 %v508_v61, %v507_v60  ;;  %769 = vmatpush3.bf16.msra.mxu1 %v514_v48 }
 0x10a   : > { %v515_v1 = vpack.c.bf16 %v506_v63, %v505_v62 }
 0x10c   : > { %770 = vmatprep.subr.bf16.mxu1 %v515_v1 }
 0x10d   : > { %771 = vmatpush3.bf16.msra.mxu1 %v515_v1 }
 0x10e   : > { %772 = vmatprep.subr.bf16.mxu1 %v516_v0 }
 0x111   : > { %773 = vmatpush3.bf16.msra.mxu1 %v516_v0 }
 0x114   : > { %775 = vmatmul.mubr.msk.bf16.vlgmr.msra.gmra.mrb[0].mxu1 %vm551_vm1, %v812_v2 }
 0x1e7   : > { %v776_v7 = vpop.f32.mrb[0].mxu1 }
 0x1e8   : > { %v592_v8 = vpop.f32.mrb[1].mxu1  ;;  %v601_v9 = vadd.f32 %v776_v7, %v534_v5 }
 0x1e9   : > { %v593_v10 = vadd.f32 %v592_v8, %v524_v3  ;;  %v777_v11 = vpop.f32.mrb[2].mxu1 }
 0x1ea   : > { %v595_v13 = vpop.f32.mrb[3].mxu1  ;;  %v604_v15 = vadd.f32 %v777_v11, %v539_v6  ;;  %v609_v18 = vmax.f32 %v601_v9, 0.0 }
 0x1eb   : > { %v607_v14 = vmax.f32 %v593_v10, 0.0  ;;  %v596_v16 = vadd.f32 %v595_v13, %v529_v4 }
 0x1ec   : > { %v610_v21 = vmax.f32 %v604_v15, 0.0  ;;  %v637_v24 = vmul.f32 %v628_v23, %v609_v18 }
 0x1ed   : > { %v608_v19 = vmax.f32 %v596_v16, 0.0  ;;  %v635_v20 = vmul.f32 %v618_v12, %v607_v14 }
 0x1ee   : > { %v638_v27 = vmul.f32 %v633_v26, %v610_v21 }
 0x1ef   : > { %v636_v22 = vmul.f32 %v623_v17, %v608_v19 }
 0x1f1   : > { %v639_v25 = vadd.f32 %v636_v22, %v635_v20 }
 0x1f3   : > { %v640_v28 = vadd.f32 %v639_v25, %v637_v24 }
 0x1f5   : > { %v641_v30 = vadd.f32 %v640_v28, %v638_v27 }
 0x1f7   : > { %v642_v31 = vrot.slane %v641_v30, 4 }
 0x1f9   : > { %v643_v33 = vadd.f32 %v642_v31, %v641_v30 }
 0x1fb   : > { %v644_v34 = vrot.slane %v643_v33, 2 }
 0x1fd   : > { %v645_v36 = vadd.f32 %v644_v34, %v643_v33 }
 0x1ff   : > { %v646_v38 = vrot.slane %v645_v36, 1 }
 0x201   : > { %v647_v40 = vadd.f32 %v646_v38, %v645_v36 }
 0x203   : > { %v658_v41 = vadd.f32 %v657_v39, %v647_v40 }
 0x205   : > { %v659_v42 = vsub.f32 0.0, %v658_v41 }
 0x207   : > { %v660_v43 = vmul.f32 1.442695, %v659_v42 }
 0x209   : > { %813 = vpow2.f32 %v660_v43 }
 0x213   : > { %v814_v44 = vpop.eup %813 }
 0x214   : > { %v662_v45 = vadd.f32 1.0, %v814_v44 }
 0x216   : > { %815 = vrcp.f32 %v662_v45 }
 0x220   : > { %v816_v46 = vpop.eup %815 }
 0x221   : > { %664 = vst [vmem:[%s329_s8] sm:$0x1] %v816_v46 }
 0x222 PF: > { %p16_p9 = scmp.ge.s32.totalorder %s902_s29, 4   ;;  %s1019_s26 = smov %s835_s27 }
 0x223   : > { %s1020_s27 = smov %s911_s9  ;;  %s1021_s28 = smov %s902_s29 }
 0x224   :  { %18 = sbr.rel (!%p16_p9) target bundleno = 5 (0x5), region = 124 }

</bundles_post_ra>
